<compile_context>
chip_gen: v7x
topology: tpu7x:2x2x1
jax: 0.10.0
libtpu: 0.0.40
codegen_flags: <defaults>
</compile_context>

<pallas_src>
import jax
import jax.numpy as jnp
from jax.experimental import pallas as pl
from jax.experimental.pallas import tpu as pltpu


INPUT_SIZE = 14
HIDDEN_SIZES = (128, 96, 64, 32, 16)
LAYER_IN = (INPUT_SIZE,) + HIDDEN_SIZES          # (14, 128, 96, 64, 32, 16)
LAYER_OUT = HIDDEN_SIZES + (1,)                  # (128, 96, 64, 32, 16, 1)
NUM_LAYERS = len(LAYER_IN)                       # 6
NUM_MXU_LAYERS = NUM_LAYERS - 1                  # 5 layers on the MXU; last on VPU
MAX_DIM = 128                                    # every MXU layer dim padded to 128
MAX_TB = 2048                                    # max batch tile width (lanes)
B_LAST_COL = NUM_LAYERS - 1                      # bias-slab column of last-layer bias (5)
W_LAST_COL = 6                                   # bias-slab column holding last-layer weight


def _round_up(n, m):
    return ((n + m - 1) // m) * m


def _pick_tb(B):
    """Batch tile width: full batch for small B; else a multiple of 256 chosen so
    the grid has >= 2 tiles (v7x megacore) and TB <= MAX_TB."""
    if B <= 256:
        return B                                  # single full-array tile (any B is legal)
    return min(MAX_TB, _round_up(-(-B // 2), 256))


def _mlp_kernel(x_ref, w_ref, b_ref, out_ref):
    """x_ref: (14, TB) bf16      w_ref: (5, 128, 128) bf16
       b_ref: (128, 8)  f32      out_ref: (1, TB) f32"""
    tb = x_ref.shape[1]

    def chain(h):
        # h: (14, tbh) bf16 -> (1, tbh) f32 probabilities.
        for i in range(NUM_MXU_LAYERS):                              # static unroll
            fin, fout = LAYER_IN[i], LAYER_OUT[i]
            w = w_ref[i, :fout, :fin]                                # (fout, fin) bf16
            z = jnp.dot(w, h, preferred_element_type=jnp.float32)   # (fout, tbh) f32
            z = z + b_ref[:fout, i:i + 1]                            # bias bcast over lanes
            h = jnp.maximum(z, 0.0).astype(jnp.bfloat16)             # ReLU -> bf16 MXU in
        # Final 16 -> 1 layer on the VPU/XLU: elementwise mul + sublane reduce.
        hf = h.astype(jnp.float32)                                   # (16, tbh)
        w_last = b_ref[:LAYER_IN[-1], W_LAST_COL:W_LAST_COL + 1]     # (16, 1) f32
        z = jnp.sum(w_last * hf, axis=0, keepdims=True)              # (1, tbh)
        z = z + b_ref[0:1, B_LAST_COL:B_LAST_COL + 1]                # last-layer bias
        return jax.nn.sigmoid(z)

    if tb % 256 == 0:
        # Two independent lane half-tiles -> two dependency chains the scheduler
        # can interleave (hides MXU fill/drain + MRF pop on v5e/v6e).
        half = tb // 2
        out_ref[:, :half] = chain(x_ref[:, :half]).astype(out_ref.dtype)
        out_ref[:, half:] = chain(x_ref[:, half:]).astype(out_ref.dtype)
    else:
        out_ref[...] = chain(x_ref[...]).astype(out_ref.dtype)


def init_params(key):
    """PyTorch-style uniform(-1/sqrt(fan_in), 1/sqrt(fan_in)) init, packed into slabs.

    Returns (w_slab, b_slab):
      w_slab: (5, 128, 128) bf16 — MXU layer i weight (out_i, in_i) at [i, :out_i, :in_i]
      b_slab: (128, 8) f32       — layer i bias (out_i,) at [:out_i, i];
                                   last-layer (16->1) weight vector (f32) at [:16, 6]
    """
    w_slab = jnp.zeros((NUM_MXU_LAYERS, MAX_DIM, MAX_DIM), jnp.bfloat16)
    b_slab = jnp.zeros((MAX_DIM, 8), jnp.float32)
    for i, (fin, fout) in enumerate(zip(LAYER_IN, LAYER_OUT)):
        key, kw, kb = jax.random.split(key, 3)
        bound = 1.0 / (fin ** 0.5)
        w = jax.random.uniform(kw, (fout, fin), jnp.float32, -bound, bound)
        b = jax.random.uniform(kb, (fout,), jnp.float32, -bound, bound)
        if i < NUM_MXU_LAYERS:
            w_slab = w_slab.at[i, :fout, :fin].set(w.astype(jnp.bfloat16))
        else:
            b_slab = b_slab.at[:fin, W_LAST_COL].set(w[0])           # (16,) f32
        b_slab = b_slab.at[:fout, i].set(b)
    return w_slab, b_slab


@jax.jit
def race_predictor(x, w_slab, b_slab):
    """x: (B, 14) float -> (B,) float32 in [0, 1]   (scalar if B == 1, like .squeeze())."""
    B = x.shape[0]
    TB = _pick_tb(B)

    # Feature-major, bf16: (14, B).  Batch lands on lanes.  No padding — Pallas
    # masks the ragged last block (grid = cdiv(B, TB)).
    x_t = x.astype(jnp.bfloat16).T

    out = pl.pallas_call(
        _mlp_kernel,
        out_shape=jax.ShapeDtypeStruct((1, B), jnp.float32),
        grid=(pl.cdiv(B, TB),),
        in_specs=[
            pl.BlockSpec((INPUT_SIZE, TB), lambda i: (0, i)),            # x tile (pipelined)
            pl.BlockSpec((NUM_MXU_LAYERS, MAX_DIM, MAX_DIM),             # weight slab,
                         lambda i: (0, 0, 0)),                           #  VMEM-resident
            pl.BlockSpec((MAX_DIM, 8), lambda i: (0, 0)),                # bias/last-W slab
        ],
        out_specs=pl.BlockSpec((1, TB), lambda i: (0, i)),               # lane-dense output
        compiler_params=pltpu.CompilerParams(
            dimension_semantics=("parallel",)),                          # 2x on v7x megacore
    )(x_t, w_slab, b_slab)

    # torch .squeeze(): (B, 1) -> (B,), and scalar when B == 1.
    return jnp.squeeze(out[0])


def _reference_forward(x, w_slab, b_slab):
    """Pure-JAX (non-Pallas) reference with matching bf16/f32 precision."""
    h = x.astype(jnp.bfloat16)
    for i in range(NUM_MXU_LAYERS):
        fin, fout = LAYER_IN[i], LAYER_OUT[i]
        w = w_slab[i, :fout, :fin]                                       # (fout, fin) bf16
        z = jnp.dot(h, w.T, preferred_element_type=jnp.float32)
        z = z + b_slab[:fout, i][None, :]
        h = jnp.maximum(z, 0.0).astype(jnp.bfloat16)
    w_last = b_slab[:LAYER_IN[-1], W_LAST_COL]                           # (16,) f32
    z = jnp.dot(h.astype(jnp.float32), w_last) + b_slab[0, B_LAST_COL]   # (B,)
    return jnp.squeeze(jax.nn.sigmoid(z))


if __name__ == "__main__":
    key = jax.random.PRNGKey(0)
    key, kx1, kx2, kx3 = jax.random.split(key, 4)
    w_slab, b_slab = init_params(key)

    # Small batch: single full-array tile, single chain.
    B1 = 8
    x1 = jax.random.normal(kx1, (B1, INPUT_SIZE), dtype=jnp.float32)
    y1 = race_predictor(x1, w_slab, b_slab)
    jax.block_until_ready(y1)
    assert y1.shape == (B1,), y1.shape
    assert bool(jnp.all(jnp.isfinite(y1)))
    assert bool(jnp.all((y1 >= 0.0) & (y1 <= 1.0)))
    assert bool(jnp.allclose(y1, _reference_forward(x1, w_slab, b_slab),
                             atol=1e-3, rtol=1e-3))

    # Mid batch: TB = 256, 2 tiles (256 + ragged 44), dual 128-lane chains.
    B2 = 300
    x2 = jax.random.normal(kx2, (B2, INPUT_SIZE), dtype=jnp.float32)
    y2 = race_predictor(x2, w_slab, b_slab)
    jax.block_until_ready(y2)
    assert y2.shape == (B2,), y2.shape
    assert bool(jnp.allclose(y2, _reference_forward(x2, w_slab, b_slab),
                             atol=1e-3, rtol=1e-3))

    # Larger batch: TB = 512, 2 tiles (512 + ragged 128), dual 256-lane chains.
    B3 = 640
    x3 = jax.random.normal(kx3, (B3, INPUT_SIZE), dtype=jnp.float32)
    y3 = race_predictor(x3, w_slab, b_slab)
    jax.block_until_ready(y3)
    assert y3.shape == (B3,), y3.shape
    assert bool(jnp.all(jnp.isfinite(y3)))
    assert bool(jnp.allclose(y3, _reference_forward(x3, w_slab, b_slab),
                             atol=1e-3, rtol=1e-3))

    print("KERNEL_OK")
</pallas_src>

<mosaic_0001>
module attributes {stable_mosaic.version = 11 : i64} {
  func.func @_mlp_kernel(%arg0: i32, %arg1: memref<14x8xbf16, #tpu.memory_space<vmem>>, %arg2: memref<5x128x128xbf16, #tpu.memory_space<vmem>>, %arg3: memref<128x8xf32, #tpu.memory_space<vmem>>, %arg4: memref<1x8xf32, #tpu.memory_space<vmem>>) attributes {dimension_semantics = [#tpu.dimension_semantics<parallel>], iteration_bounds = array<i64: 1>, scalar_prefetch = 0 : i64, scratch_operands = 0 : i64, tpu.core_type = #tpu.core_type<tc>, window_params = [{transform_indices = @transform_0, window_bounds = array<i64: 14, 8>}, {pipeline_mode = #tpu.pipeline_mode<synchronous>, transform_indices = @transform_1, window_bounds = array<i64: 5, 128, 128>}, {pipeline_mode = #tpu.pipeline_mode<synchronous>, transform_indices = @transform_2, window_bounds = array<i64: 128, 8>}, {transform_indices = @transform_3, window_bounds = array<i64: 1, 8>}]} {
    %c0 = arith.constant 0 : index
    %c0_0 = arith.constant 0 : index
    %0 = vector.load %arg1[%c0, %c0_0] : memref<14x8xbf16, #tpu.memory_space<vmem>>, vector<14x8xbf16>
    %c0_1 = arith.constant 0 : index
    %c0_2 = arith.constant 0 : index
    %c0_3 = arith.constant 0 : index
    %1 = vector.load %arg2[%c0_1, %c0_2, %c0_3] : memref<5x128x128xbf16, #tpu.memory_space<vmem>>, vector<1x128x14xbf16>
    %2 = vector.shape_cast %1 : vector<1x128x14xbf16> to vector<128x14xbf16>
    %cst = arith.constant dense<0.000000e+00> : vector<128x8xf32>
    %3 = tpu.matmul %2, %0, %cst {dimension_numbers = #tpu.dot_dimension_numbers<[1], [0], [0], [1], [0, 0, 1, 1], [], []>} : vector<128x14xbf16>, vector<14x8xbf16>, vector<128x8xf32> -> vector<128x8xf32>
    %c0_4 = arith.constant 0 : index
    %c0_5 = arith.constant 0 : index
    %4 = vector.load %arg3[%c0_4, %c0_5] : memref<128x8xf32, #tpu.memory_space<vmem>>, vector<128x1xf32>
    %5 = vector.broadcast %4 : vector<128x1xf32> to vector<128x8xf32>
    %6 = arith.addf %3, %5 : vector<128x8xf32>
    %cst_6 = arith.constant 0.000000e+00 : f32
    %7 = vector.broadcast %cst_6 : f32 to vector<128x8xf32>
    %8 = arith.maximumf %6, %7 : vector<128x8xf32>
    %9 = arith.truncf %8 : vector<128x8xf32> to vector<128x8xbf16>
    %c1 = arith.constant 1 : index
    %c0_7 = arith.constant 0 : index
    %c0_8 = arith.constant 0 : index
    %10 = vector.load %arg2[%c1, %c0_7, %c0_8] : memref<5x128x128xbf16, #tpu.memory_space<vmem>>, vector<1x96x128xbf16>
    %11 = vector.shape_cast %10 : vector<1x96x128xbf16> to vector<96x128xbf16>
    %cst_9 = arith.constant dense<0.000000e+00> : vector<96x8xf32>
    %12 = tpu.matmul %11, %9, %cst_9 {dimension_numbers = #tpu.dot_dimension_numbers<[1], [0], [0], [1], [0, 0, 1, 1], [], []>} : vector<96x128xbf16>, vector<128x8xbf16>, vector<96x8xf32> -> vector<96x8xf32>
    %c0_10 = arith.constant 0 : index
    %c1_11 = arith.constant 1 : index
    %13 = vector.load %arg3[%c0_10, %c1_11] : memref<128x8xf32, #tpu.memory_space<vmem>>, vector<96x1xf32>
    %14 = vector.broadcast %13 : vector<96x1xf32> to vector<96x8xf32>
    %15 = arith.addf %12, %14 : vector<96x8xf32>
    %cst_12 = arith.constant 0.000000e+00 : f32
    %16 = vector.broadcast %cst_12 : f32 to vector<96x8xf32>
    %17 = arith.maximumf %15, %16 : vector<96x8xf32>
    %18 = arith.truncf %17 : vector<96x8xf32> to vector<96x8xbf16>
    %c2 = arith.constant 2 : index
    %c0_13 = arith.constant 0 : index
    %c0_14 = arith.constant 0 : index
    %19 = vector.load %arg2[%c2, %c0_13, %c0_14] : memref<5x128x128xbf16, #tpu.memory_space<vmem>>, vector<1x64x96xbf16>
    %20 = vector.shape_cast %19 : vector<1x64x96xbf16> to vector<64x96xbf16>
    %cst_15 = arith.constant dense<0.000000e+00> : vector<64x8xf32>
    %21 = tpu.matmul %20, %18, %cst_15 {dimension_numbers = #tpu.dot_dimension_numbers<[1], [0], [0], [1], [0, 0, 1, 1], [], []>} : vector<64x96xbf16>, vector<96x8xbf16>, vector<64x8xf32> -> vector<64x8xf32>
    %c0_16 = arith.constant 0 : index
    %c2_17 = arith.constant 2 : index
    %22 = vector.load %arg3[%c0_16, %c2_17] : memref<128x8xf32, #tpu.memory_space<vmem>>, vector<64x1xf32>
    %23 = vector.broadcast %22 : vector<64x1xf32> to vector<64x8xf32>
    %24 = arith.addf %21, %23 : vector<64x8xf32>
    %cst_18 = arith.constant 0.000000e+00 : f32
    %25 = vector.broadcast %cst_18 : f32 to vector<64x8xf32>
    %26 = arith.maximumf %24, %25 : vector<64x8xf32>
    %27 = arith.truncf %26 : vector<64x8xf32> to vector<64x8xbf16>
    %c3 = arith.constant 3 : index
    %c0_19 = arith.constant 0 : index
    %c0_20 = arith.constant 0 : index
    %28 = vector.load %arg2[%c3, %c0_19, %c0_20] : memref<5x128x128xbf16, #tpu.memory_space<vmem>>, vector<1x32x64xbf16>
    %29 = vector.shape_cast %28 : vector<1x32x64xbf16> to vector<32x64xbf16>
    %cst_21 = arith.constant dense<0.000000e+00> : vector<32x8xf32>
    %30 = tpu.matmul %29, %27, %cst_21 {dimension_numbers = #tpu.dot_dimension_numbers<[1], [0], [0], [1], [0, 0, 1, 1], [], []>} : vector<32x64xbf16>, vector<64x8xbf16>, vector<32x8xf32> -> vector<32x8xf32>
    %c0_22 = arith.constant 0 : index
    %c3_23 = arith.constant 3 : index
    %31 = vector.load %arg3[%c0_22, %c3_23] : memref<128x8xf32, #tpu.memory_space<vmem>>, vector<32x1xf32>
    %32 = vector.broadcast %31 : vector<32x1xf32> to vector<32x8xf32>
    %33 = arith.addf %30, %32 : vector<32x8xf32>
    %cst_24 = arith.constant 0.000000e+00 : f32
    %34 = vector.broadcast %cst_24 : f32 to vector<32x8xf32>
    %35 = arith.maximumf %33, %34 : vector<32x8xf32>
    %36 = arith.truncf %35 : vector<32x8xf32> to vector<32x8xbf16>
    %c4 = arith.constant 4 : index
    %c0_25 = arith.constant 0 : index
    %c0_26 = arith.constant 0 : index
    %37 = vector.load %arg2[%c4, %c0_25, %c0_26] : memref<5x128x128xbf16, #tpu.memory_space<vmem>>, vector<1x16x32xbf16>
    %38 = vector.shape_cast %37 : vector<1x16x32xbf16> to vector<16x32xbf16>
    %cst_27 = arith.constant dense<0.000000e+00> : vector<16x8xf32>
    %39 = tpu.matmul %38, %36, %cst_27 {dimension_numbers = #tpu.dot_dimension_numbers<[1], [0], [0], [1], [0, 0, 1, 1], [], []>} : vector<16x32xbf16>, vector<32x8xbf16>, vector<16x8xf32> -> vector<16x8xf32>
    %c0_28 = arith.constant 0 : index
    %c4_29 = arith.constant 4 : index
    %40 = vector.load %arg3[%c0_28, %c4_29] : memref<128x8xf32, #tpu.memory_space<vmem>>, vector<16x1xf32>
    %41 = vector.broadcast %40 : vector<16x1xf32> to vector<16x8xf32>
    %42 = arith.addf %39, %41 : vector<16x8xf32>
    %cst_30 = arith.constant 0.000000e+00 : f32
    %43 = vector.broadcast %cst_30 : f32 to vector<16x8xf32>
    %44 = arith.maximumf %42, %43 : vector<16x8xf32>
    %45 = arith.truncf %44 : vector<16x8xf32> to vector<16x8xbf16>
    %46 = arith.extf %45 : vector<16x8xbf16> to vector<16x8xf32>
    %c0_31 = arith.constant 0 : index
    %c6 = arith.constant 6 : index
    %47 = vector.load %arg3[%c0_31, %c6] : memref<128x8xf32, #tpu.memory_space<vmem>>, vector<16x1xf32>
    %48 = vector.broadcast %47 : vector<16x1xf32> to vector<16x8xf32>
    %49 = arith.mulf %48, %46 : vector<16x8xf32>
    %cst_32 = arith.constant dense<0.000000e+00> : vector<8xf32>
    %50 = vector.multi_reduction <add>, %49, %cst_32 [0] : vector<16x8xf32> to vector<8xf32>
    %51 = vector.shape_cast %50 : vector<8xf32> to vector<1x8xf32>
    %c0_33 = arith.constant 0 : index
    %c5 = arith.constant 5 : index
    %52 = vector.load %arg3[%c0_33, %c5] : memref<128x8xf32, #tpu.memory_space<vmem>>, vector<1x1xf32>
    %53 = vector.broadcast %52 : vector<1x1xf32> to vector<1x8xf32>
    %54 = arith.addf %51, %53 : vector<1x8xf32>
    %55 = arith.negf %54 : vector<1x8xf32>
    %56 = math.exp %55 : vector<1x8xf32>
    %cst_34 = arith.constant 1.000000e+00 : f32
    %57 = vector.broadcast %cst_34 : f32 to vector<1x8xf32>
    %58 = arith.addf %57, %56 : vector<1x8xf32>
    %59 = arith.divf %57, %58 : vector<1x8xf32>
    %c0_35 = arith.constant 0 : index
    %c0_36 = arith.constant 0 : index
    %60 = vector.load %arg4[%c0_35, %c0_36] : memref<1x8xf32, #tpu.memory_space<vmem>>, vector<1x8xf32>
    tpu.vector_store %arg4[%c0_35, %c0_36], %59 {strides = array<i32>} : memref<1x8xf32, #tpu.memory_space<vmem>>, vector<1x8xf32>,
    return
  }
  func.func @transform_0(%arg0: i32) -> (i32, i32) {
    %c0_i32 = arith.constant 0 : i32
    %c0_i32_0 = arith.constant 0 : i32
    return %c0_i32, %arg0 : i32, i32
  }
  func.func @transform_1(%arg0: i32) -> (i32, i32, i32) {
    %c0_i32 = arith.constant 0 : i32
    %c0_i32_0 = arith.constant 0 : i32
    %c0_i32_1 = arith.constant 0 : i32
    %c0_i32_2 = arith.constant 0 : i32
    return %c0_i32, %c0_i32_0, %c0_i32_1 : i32, i32, i32
  }
  func.func @transform_2(%arg0: i32) -> (i32, i32) {
    %c0_i32 = arith.constant 0 : i32
    %c0_i32_0 = arith.constant 0 : i32
    %c0_i32_1 = arith.constant 0 : i32
    return %c0_i32, %c0_i32_0 : i32, i32
  }
  func.func @transform_3(%arg0: i32) -> (i32, i32) {
    %c0_i32 = arith.constant 0 : i32
    %c0_i32_0 = arith.constant 0 : i32
    return %c0_i32, %arg0 : i32, i32
  }
}

</mosaic_0001>

<bundles_post_ra>
// kernel: race_predictor.1
= control target key start
LH: loop header
LB: loop body
LE: loop exit
PB: predicated region body
PF: predicated region fallthrough
CT: control target
= control target key end

     0   :  { %8 = vsyncpa [#allocation3], 0  ;;  %s1386_s0 = inlined_call_operand.vmem [shape: bf16[14,8], index: 0, kind: input, shape index: {}]   ;;  %s1387_s1 = inlined_call_operand.hbm [shape: bf16[5,128,128], index: 1, kind: input, shape index: {}]   ;;  %s1388_s2 = inlined_call_operand.vmem [shape: f32[128,8], index: 2, kind: input, shape index: {}]   ;;  %s1389_s3 = inlined_call_operand.hbm [shape: f32[1,8], index: 3, kind: output, shape index: {}]  }
   0x1   :  { %9 = vsyncpa [#allocation4], 0  ;;  %s1213_s12 = smov [#allocation2]   ;;  %s1165_s16 = scalar_lea.hbm %s1387_s1, 5120 }
   0x2   :  { %s17_s13 = sshll.u32 %s1213_s12, 4  ;;  %p1166_p0 = scmp.ne.s32.totalorder %s1387_s1, %s1165_s16  ;;  %s18_s13 = int_to_ptr.vmem [resolvable:$true] %s17_s13 }
   0x3   :  { %p1169_p1 = scmp.lt.u32.totalorder %s1165_s16, %s1387_s1 }
   0x5   :  { %p1171_p2 = pnand %p1169_p1, %p1166_p0 }
   0x7   :  { %1174 = shalt.err (!%p1171_p2)
}
   0x8   :  { %s1175_s21 = scalar_lea.vmem %s18_s13, 5120  ;;  %p1180_p4 = scmp.lt.s32.totalorder %s18_s13, %s18_s13 }
   0x9   :  { %p1176_p3 = scmp.ne.s32.totalorder %s18_s13, %s1175_s21  ;;  %p1181_p5 = scmp.lt.s32.totalorder %s1175_s21, %s1175_s21 }
   0xb   :  { %p1182_p6 = por %p1181_p5, %p1180_p4 }
   0xd   :  { %p1183_p7 = pnand %p1182_p6, %p1176_p3 }
   0xf   :  { %1186 = shalt.err (!%p1183_p7)
}
  0x10   :  { %s1214_s22 = smov 64   ;;  %s1215_s23 = smov 4  }
  0x11   :  { %23 = dma.hbm_to_vmem [thread:$0]  %s1387_s1, 5120, %s18_s13, [#allocation3], %s1214_s22, %s1214_s22, %s1215_s23  }
  0x12   :  { %1209 = dma.done.wait [#allocation3], 5120  }
  0x13   :  { %1210 = vsyncadd [#allocation3], 4294962176  ;;  %v1216_v0 = vmov 0   ;;  %vm214_vm0 = vcmask 1046528   ;;  %vm189_vm1 = vcmask 113664   ;;  %v1140_v2 = vld [vmem:[#allocation2] sm:$0xff]  }
  0x14   :  { %1127 = vset.pattern.permute.xlu0 %v1216_v0  ;;  %1128 = vset.pattern.permute.xlu1 %v1216_v0  ;;  %v1139_v1 = vld [vmem:[%s1386_s0] sm:$0x7f]   ;;  %v1141_v4 = vld [vmem:[#allocation2 + $0x8] sm:$0xff]   ;;  %v1142_v5 = vld [vmem:[#allocation2 + $0x10] sm:$0xff]   ;;  %v1217_v28 = vmov 1   ;;  %vm636_vm2 = vcmask 785408  }
  0x15   :  { %1113 = vmatprep.subr.msk.bf16.mxu0 %vm214_vm0, %v1139_v1  ;;  %v216_v3 = vsel %vm214_vm0, %v1139_v1, 0  ;;  %1029 = vmatprep.mubr.msk.bf16.mxu0 %vm189_vm1, %v1140_v2  ;;  %v1267_v6 = vld [vmem:[%s1388_s2] sm:$0xff]  ;;  %v1272_v7 = vld [vmem:[%s1388_s2 + $0x10] sm:$0xff]  ;;  %v1143_v8 = vld [vmem:[#allocation2 + $0x18] sm:$0xff]   ;;  %vm765_vm3 = vcmask 523264   ;;  %vm1221_vm4 = vmmov 0  }
  0x16   :  { %1028 = vmatpush3.bf16.msra.mxu0 %v216_v3  ;;  %66 = vperm.xlu0 %1127, %v1267_v6   ;;  %v1144_v9 = vld [vmem:[#allocation2 + $0x20] sm:$0xff]   ;;  %v1279_v10 = vld [vmem:[%s1388_s2 + $0x8] sm:$0xff]  ;;  %v1284_v11 = vld [vmem:[%s1388_s2 + $0x18] sm:$0xff]  ;;  %vm847_vm5 = vcmask 261120   ;;  %vm907_vm6 = vcmask 64512   ;;  %vm930_vm7 = vcmask 57344  }
  0x17   :  { %76 = vperm.xlu1 %1128, %v1272_v7   ;;  %v1289_v12 = vld [vmem:[%s1388_s2 + $0x20] sm:$0xff]  ;;  %v1296_v13 = vld [vmem:[%s1388_s2 + $0x28] sm:$0xff]  ;;  %v1146_v15 = vld [vmem:[#allocation2 + $0x30] sm:$0xff]  }
  0x18   :  { %v1145_v14 = vld [vmem:[#allocation2 + $0x28] sm:$0xff]   ;;  %v1303_v16 = vld [vmem:[%s1388_s2 + $0x30] sm:$0xff]  ;;  %v1309_v17 = vld [vmem:[%s1388_s2 + $0x38] sm:$0xff] }
  0x19   :  { %1030 = vmatmul.mubr.msk.bf16.vlgmr.msra.gmra.mrb[0].mxu0 %vm189_vm1, %v1141_v4  ;;  %v56_v18 = vld [vmem:[%s1388_s2 + $0x40] sm:$0xff]  ;;  %v57_v19 = vld [vmem:[%s1388_s2 + $0x48] sm:$0xff]  ;;  %v1147_v20 = vld [vmem:[#allocation2 + $0x38] sm:$0xff]  }
  0x1a   :  { %1033 = vmatprep.mubr.msk.bf16.mxu0 %vm189_vm1, %v1142_v5  ;;  %71 = vperm.xlu0 %1127, %v1279_v10   ;;  %v58_v21 = vld [vmem:[%s1388_s2 + $0x50] sm:$0xff]  ;;  %v59_v22 = vld [vmem:[%s1388_s2 + $0x58] sm:$0xff]  ;;  %v60_v23 = vld [vmem:[%s1388_s2 + $0x60] sm:$0xff] }
  0x1b   :  { %81 = vperm.xlu1 %1128, %v1284_v11   ;;  %v61_v24 = vld [vmem:[%s1388_s2 + $0x68] sm:$0xff]  ;;  %v62_v25 = vld [vmem:[%s1388_s2 + $0x70] sm:$0xff]  ;;  %v63_v26 = vld [vmem:[%s1388_s2 + $0x78] sm:$0xff] }
  0x1c   :  { %v1148_v27 = vld [vmem:[#allocation2 + $0x40] sm:$0xff]  }
  0x1d   :  { %1061 = vmatprep.mubr.bf16.mxu1 %v1148_v27 }
  0x1e   :  { %86 = vperm.xlu0 %1127, %v1289_v12  }
  0x1f   :  { %91 = vperm.xlu1 %1128, %v1296_v13  }
  0x21   :  { %1034 = vmatmul.mubr.msk.bf16.gmra.mrb[4].mxu0 %vm189_vm1, %v1143_v8 }
  0x22   :  { %1037 = vmatprep.mubr.msk.bf16.mxu0 %vm189_vm1, %v1144_v9  ;;  %96 = vperm.xlu0 %1127, %v1303_v16  }
  0x23   :  { %101 = vperm.xlu1 %1128, %v1309_v17  }
  0x26   :  { %106 = vperm.xlu0 %1127, %v56_v18  }
  0x27   :  { %111 = vperm.xlu1 %1128, %v57_v19  }
  0x29   :  { %1038 = vmatmul.mubr.msk.bf16.gmra.mrb[8].mxu0 %vm189_vm1, %v1145_v14 }
  0x2a   :  { %1041 = vmatprep.mubr.msk.bf16.mxu0 %vm189_vm1, %v1146_v15  ;;  %116 = vperm.xlu0 %1127, %v58_v21  }
  0x2b   :  { %121 = vperm.xlu1 %1128, %v59_v22  }
  0x2e   :  { %126 = vperm.xlu0 %1127, %v60_v23  }
  0x2f   :  { %131 = vperm.xlu1 %1128, %v61_v24  }
  0x31   :  { %1042 = vmatmul.mubr.msk.bf16.gmra.mrb[12].mxu0 %vm189_vm1, %v1147_v20 }
  0x32   :  { %136 = vperm.xlu0 %1127, %v62_v25  }
  0x33   :  { %141 = vperm.xlu1 %1128, %v63_v26  }
  0x36   :  { %1129 = vset.pattern.permute.xlu0 %v1217_v28 }
  0x37   :  { %1130 = vset.pattern.permute.xlu1 %v1217_v28  ;;  %366 = vperm.xlu0 %1129, %v1267_v6  }
  0x38   :  { %371 = vperm.xlu1 %1130, %v1279_v10  }
  0x3b   :  { %381 = vperm.xlu0 %1129, %v1284_v11  }
  0x3c   :  { %376 = vperm.xlu1 %1130, %v1272_v7  }
  0x3f   :  { %391 = vperm.xlu0 %1129, %v1296_v13  }
  0x40   :  { %386 = vperm.xlu1 %1130, %v1289_v12  }
  0x43   :  { %401 = vperm.xlu0 %1129, %v1309_v17  }
  0x44   :  { %396 = vperm.xlu1 %1130, %v1303_v16  }
  0x47   :  { %411 = vperm.xlu0 %1129, %v57_v19  }
  0x48   :  { %406 = vperm.xlu1 %1130, %v56_v18  }
  0x4b   :  { %421 = vperm.xlu0 %1129, %v59_v22  }
  0x4c   :  { %416 = vperm.xlu1 %1130, %v58_v21  }
  0x95   :  { %v67_v29 = vpop.permute.xlu0 %66 }
  0x96   :  { %v77_v30 = vpop.permute.xlu1 %76 }
  0x99   :  { %v72_v31 = vpop.permute.xlu0 %71 }
  0x9a   :  { %v82_v32 = vpop.permute.xlu1 %81 }
  0x9d   :  { %v87_v33 = vpop.permute.xlu0 %86 }
  0x9e   :  { %v92_v34 = vpop.permute.xlu1 %91 }
  0xa1   :  { %v97_v35 = vpop.permute.xlu0 %96 }
  0xa2   :  { %v102_v39 = vpop.permute.xlu1 %101 }
  0xa5   :  { %v107_v47 = vpop.permute.xlu0 %106 }
  0xa6   :  { %v112_v51 = vpop.permute.xlu1 %111 }
  0xa9   :  { %v117_v60 = vpop.permute.xlu0 %116 }
  0xaa   :  { %v122_v0 = vpop.permute.xlu1 %121 }
  0xad   :  { %v127_v14 = vpop.permute.xlu0 %126 }
  0xae   :  { %v132_v21 = vpop.permute.xlu1 %131 }
  0xb1   :  { %v137_v28 = vpop.permute.xlu0 %136 }
  0xec   :  { %v1031_v36 = vpop.f32.mrb[0].mxu0 }
  0xed   :  { %v261_v37 = vadd.f32 %v1031_v36, %v77_v30  ;;  %v252_v38 = vpop.f32.mrb[1].mxu0 }
  0xee   :  { %v253_v40 = vadd.f32 %v252_v38, %v67_v29  ;;  %v1032_v41 = vpop.f32.mrb[2].mxu0 }
  0xef   :  { %v264_v42 = vadd.f32 %v1032_v41, %v82_v32  ;;  %v255_v43 = vpop.f32.mrb[3].mxu0  ;;  %v317_v45 = vmax.f32 %v261_v37, 0.0 }
  0xf0   :  { %v256_v44 = vadd.f32 %v255_v43, %v72_v31  ;;  %v315_v48 = vmax.f32 %v253_v40, 0.0 }
  0xf1   :  { %v318_v46 = vmax.f32 %v264_v42, 0.0 }
  0xf2   :  { %v316_v49 = vmax.f32 %v256_v44, 0.0 }
  0xf3   :  { %v332_v50 = vpack.c.bf16 %v318_v46, %v317_v45  ;;  %v1149_v45 = vld [vmem:[#allocation2 + $0x48] sm:$0xff]   ;;  %v1150_v46 = vld [vmem:[#allocation2 + $0x50] sm:$0xff]  }
  0xf4   :  { %v1035_v52 = vpop.f32.mrb[4].mxu0  ;;  %v331_v53 = vpack.c.bf16 %v316_v49, %v315_v48  ;;  %v1152_v48 = vld [vmem:[#allocation2 + $0x60] sm:$0xff]   ;;  %v1153_v49 = vld [vmem:[#allocation2 + $0x68] sm:$0xff]  }
  0xf5   :  { %v277_v54 = vadd.f32 %v1035_v52, %v97_v35  ;;  %v268_v55 = vpop.f32.mrb[5].mxu0 }
  0xf6   :  { %v269_v56 = vadd.f32 %v268_v55, %v87_v33  ;;  %v1036_v57 = vpop.f32.mrb[6].mxu0  ;;  %1045 = vmatprep.subr.bf16.mxu1 %v331_v53  ;;  %v142_v33 = vpop.permute.xlu1 %141 }
  0xf7   :  { %v280_v58 = vadd.f32 %v1036_v57, %v102_v39  ;;  %v271_v59 = vpop.f32.mrb[7].mxu0  ;;  %1046 = vmatpush3.bf16.msra.mxu1 %v331_v53  ;;  %v321_v62 = vmax.f32 %v277_v54, 0.0  ;;  %v367_v53 = vpop.permute.xlu0 %366 }
  0xf8   :  { %v272_v61 = vadd.f32 %v271_v59, %v92_v34  ;;  %1047 = vmatprep.subr.bf16.mxu1 %v332_v50  ;;  %v319_v1 = vmax.f32 %v269_v56, 0.0 }
  0xf9   :  { %v322_v63 = vmax.f32 %v280_v58, 0.0 }
  0xfa   :  { %v320_v2 = vmax.f32 %v272_v61, 0.0  ;;  %v372_v52 = vpop.permute.xlu1 %371 }
  0xfb   :  { %v334_v3 = vpack.c.bf16 %v322_v63, %v321_v62  ;;  %1048 = vmatpush3.bf16.msra.mxu1 %v332_v50  ;;  %v1154_v50 = vld [vmem:[#allocation2 + $0x80] sm:$0xff]   ;;  %v382_v55 = vpop.permute.xlu0 %381 }
  0xfc   :  { %v333_v4 = vpack.c.bf16 %v320_v2, %v319_v1  ;;  %v1039_v5 = vpop.f32.mrb[8].mxu0  ;;  %1085 = vmatprep.mubr.msk.bf16.mxu0 %vm636_vm2, %v1154_v50  ;;  %v1219_v50 = vmov 3  }
  0xfd   :  { %v293_v8 = vadd.f32 %v1039_v5, %v117_v60  ;;  %v284_v9 = vpop.f32.mrb[9].mxu0 }
  0xfe   :  { %v285_v15 = vadd.f32 %v284_v9, %v107_v47  ;;  %v1040_v18 = vpop.f32.mrb[10].mxu0  ;;  %1049 = vmatprep.subr.bf16.mxu1 %v333_v4  ;;  %v1151_v47 = vld [vmem:[#allocation2 + $0x58] sm:$0xff]   ;;  %v377_v54 = vpop.permute.xlu1 %376 }
  0xff   :  { %v296_v19 = vadd.f32 %v1040_v18, %v122_v0  ;;  %v287_v20 = vpop.f32.mrb[11].mxu0  ;;  %1050 = vmatpush3.bf16.msra.mxu1 %v333_v4  ;;  %v325_v23 = vmax.f32 %v293_v8, 0.0  ;;  %v392_v57 = vpop.permute.xlu0 %391 }
 0x100   :  { %v288_v22 = vadd.f32 %v287_v20, %v112_v51  ;;  %1051 = vmatprep.subr.bf16.mxu1 %v334_v3  ;;  %v323_v25 = vmax.f32 %v285_v15, 0.0  ;;  %v1218_v51 = vmov 2  }
 0x101   :  { %v326_v24 = vmax.f32 %v296_v19, 0.0  ;;  %1131 = vset.pattern.permute.xlu1 %v1218_v51  ;;  %1132 = vset.pattern.permute.xlu0 %v1218_v51 }
 0x102   :  { %v324_v26 = vmax.f32 %v288_v22, 0.0  ;;  %578 = vperm.xlu1 %1131, %v1267_v6   ;;  %583 = vperm.xlu0 %1132, %v1279_v10   ;;  %v387_v56 = vpop.permute.xlu1 %386 }
 0x103   :  { %v336_v27 = vpack.c.bf16 %v326_v24, %v325_v23  ;;  %1052 = vmatpush3.bf16.msra.mxu1 %v334_v3 }
 0x104   :  { %v335_v29 = vpack.c.bf16 %v324_v26, %v323_v25  ;;  %v1043_v30 = vpop.f32.mrb[12].mxu0 }
 0x105   :  { %v309_v31 = vadd.f32 %v1043_v30, %v137_v28  ;;  %v300_v32 = vpop.f32.mrb[13].mxu0 }
 0x106   :  { %v301_v34 = vadd.f32 %v300_v32, %v127_v14  ;;  %v1044_v35 = vpop.f32.mrb[14].mxu0  ;;  %1053 = vmatprep.subr.bf16.mxu1 %v335_v29  ;;  %588 = vperm.xlu1 %1131, %v1272_v7   ;;  %v397_v0 = vpop.permute.xlu1 %396 }
 0x107   :  { %v312_v36 = vadd.f32 %v1044_v35, %v142_v33  ;;  %v303_v37 = vpop.f32.mrb[15].mxu0  ;;  %1054 = vmatpush3.bf16.msra.mxu1 %v335_v29  ;;  %v329_v39 = vmax.f32 %v309_v31, 0.0  ;;  %598 = vperm.xlu0 %1132, %v1289_v12  }
 0x108   :  { %v304_v38 = vadd.f32 %v303_v37, %v132_v21  ;;  %1055 = vmatprep.subr.bf16.mxu1 %v336_v27  ;;  %v327_v41 = vmax.f32 %v301_v34, 0.0 }
 0x109   :  { %v330_v40 = vmax.f32 %v312_v36, 0.0 }
 0x10a   :  { %v328_v42 = vmax.f32 %v304_v38, 0.0  ;;  %593 = vperm.xlu1 %1131, %v1284_v11   ;;  %v407_v15 = vpop.permute.xlu1 %406 }
 0x10b   :  { %v338_v43 = vpack.c.bf16 %v330_v40, %v329_v39  ;;  %1056 = vmatpush3.bf16.msra.mxu1 %v336_v27  ;;  %608 = vperm.xlu0 %1132, %v1303_v16  }
 0x10c   :  { %v337_v44 = vpack.c.bf16 %v328_v42, %v327_v41 }
 0x10e   :  { %1057 = vmatprep.subr.bf16.mxu1 %v337_v44  ;;  %603 = vperm.xlu1 %1131, %v1296_v13   ;;  %v402_v13 = vpop.permute.xlu0 %401  ;;  %v417_v29 = vpop.permute.xlu1 %416 }
 0x10f   :  { %1058 = vmatpush3.bf16.msra.mxu1 %v337_v44  ;;  %1133 = vset.pattern.permute.xlu0 %v1219_v50 }
 0x110   :  { %1059 = vmatprep.subr.bf16.mxu1 %v338_v43  ;;  %737 = vperm.xlu0 %1133, %v1267_v6  }
 0x112   :  { %613 = vperm.xlu1 %1131, %v1309_v17   ;;  %v412_v22 = vpop.permute.xlu0 %411 }
 0x113   :  { %1060 = vmatpush3.bf16.msra.mxu1 %v338_v43 }
 0x114   :  { %752 = vperm.xlu0 %1133, %v1284_v11  }
 0x116   :  { %1062 = vmatmul.mubr.bf16.vlgmr.msra.gmra.mrb[0].mxu1 %v1149_v45  ;;  %v422_v34 = vpop.permute.xlu0 %421  ;;  %1134 = vset.pattern.permute.xlu1 %v1219_v50 }
 0x117   :  { %1065 = vmatprep.mubr.bf16.mxu1 %v1150_v46  ;;  %v1155_v46 = vld [vmem:[#allocation2 + $0x88] sm:$0xff]   ;;  %742 = vperm.xlu1 %1134, %v1279_v10  }
 0x11b   :  { %747 = vperm.xlu1 %1134, %v1272_v7  }
 0x11e   :  { %1066 = vmatmul.mubr.bf16.gmra.mrb[4].mxu1 %v1151_v47  ;;  %v1156_v47 = vld [vmem:[#allocation2 + $0x90] sm:$0xff]  }
 0x11f   :  { %1069 = vmatprep.mubr.bf16.mxu1 %v1152_v48  ;;  %v1157_v48 = vld [vmem:[#allocation2 + $0x98] sm:$0xff]  }
 0x126   :  { %1070 = vmatmul.mubr.bf16.gmra.mrb[8].mxu1 %v1153_v49  ;;  %v1158_v49 = vld [vmem:[#allocation2 + $0xc0] sm:$0xff]  }
 0x181   :  { %v579_v51 = vpop.permute.xlu1 %578 }
 0x1e9   :  { %v1063_v58 = vpop.f32.mrb[0].mxu1 }
 0x1ea   :  { %v503_v59 = vadd.f32 %v1063_v58, %v377_v54  ;;  %v494_v60 = vpop.f32.mrb[1].mxu1 }
 0x1eb   :  { %v495_v61 = vadd.f32 %v494_v60, %v367_v53  ;;  %v1064_v62 = vpop.f32.mrb[2].mxu1  ;;  %v584_v53 = vpop.permute.xlu0 %583 }
 0x1ec   :  { %v506_v12 = vadd.f32 %v1064_v62, %v382_v55  ;;  %v497_v63 = vpop.f32.mrb[3].mxu1  ;;  %v543_v16 = vmax.f32 %v503_v59, 0.0 }
 0x1ed   :  { %v498_v1 = vadd.f32 %v497_v63, %v372_v52  ;;  %v541_v3 = vmax.f32 %v495_v61, 0.0  ;;  %v589_v52 = vpop.permute.xlu1 %588 }
 0x1ee   :  { %v544_v2 = vmax.f32 %v506_v12, 0.0 }
 0x1ef   :  { %v542_v17 = vmax.f32 %v498_v1, 0.0  ;;  %v599_v58 = vpop.permute.xlu0 %598 }
 0x1f0   :  { %v554_v4 = vpack.c.bf16 %v544_v2, %v543_v16 }
 0x1f1   :  { %v553_v5 = vpack.c.bf16 %v542_v17, %v541_v3  ;;  %v1067_v8 = vpop.f32.mrb[4].mxu1  ;;  %v594_v54 = vpop.permute.xlu1 %593 }
 0x1f2   :  { %v519_v9 = vadd.f32 %v1067_v8, %v397_v0  ;;  %v510_v14 = vpop.f32.mrb[5].mxu1 }
 0x1f3   :  { %v511_v18 = vadd.f32 %v510_v14, %v387_v56  ;;  %v1068_v19 = vpop.f32.mrb[6].mxu1  ;;  %1073 = vmatprep.subr.bf16.mxu0 %v553_v5  ;;  %v609_v11 = vpop.permute.xlu0 %608 }
 0x1f4   :  { %v522_v20 = vadd.f32 %v1068_v19, %v402_v13  ;;  %v513_v21 = vpop.f32.mrb[7].mxu1  ;;  %1074 = vmatpush3.bf16.msra.mxu0 %v553_v5  ;;  %v547_v24 = vmax.f32 %v519_v9, 0.0 }
 0x1f5   :  { %v514_v23 = vadd.f32 %v513_v21, %v392_v57  ;;  %1075 = vmatprep.subr.bf16.mxu0 %v554_v4  ;;  %v545_v26 = vmax.f32 %v511_v18, 0.0  ;;  %v604_v12 = vpop.permute.xlu1 %603 }
 0x1f6   :  { %v548_v25 = vmax.f32 %v522_v20, 0.0 }
 0x1f7   :  { %v546_v27 = vmax.f32 %v514_v23, 0.0 }
 0x1f8   :  { %v556_v28 = vpack.c.bf16 %v548_v25, %v547_v24  ;;  %1076 = vmatpush3.bf16.msra.mxu0 %v554_v4  ;;  %v1159_v25 = vld [vmem:[#allocation2 + $0xc8] sm:$0xff]  }
 0x1f9   :  { %v555_v30 = vpack.c.bf16 %v546_v27, %v545_v26  ;;  %v1071_v31 = vpop.f32.mrb[8].mxu1  ;;  %v614_v5 = vpop.permute.xlu1 %613  ;;  %v1220_v26 = vmov 0.0   ;;  %v1222_v27 = vmov 4  }
 0x1fa   :  { %v535_v32 = vadd.f32 %v1071_v31, %v417_v29  ;;  %v526_v33 = vpop.f32.mrb[9].mxu1  ;;  %1105 = vmatprep.subr.bf16.mxu1 %v1220_v26  ;;  %1109 = vmatprep.mubr.msk.bf16.mxu1 %vm1221_vm4, %v1220_v26  ;;  %v1223_v29 = vmov 6  }
 0x1fb   :  { %v527_v35 = vadd.f32 %v526_v33, %v407_v15  ;;  %v1072_v36 = vpop.f32.mrb[10].mxu1  ;;  %1077 = vmatprep.subr.bf16.mxu0 %v555_v30  ;;  %1135 = vset.pattern.permute.xlu1 %v1222_v27 }
 0x1fc   :  { %v538_v37 = vadd.f32 %v1072_v36, %v422_v34  ;;  %v529_v38 = vpop.f32.mrb[11].mxu1  ;;  %1078 = vmatpush3.bf16.msra.mxu0 %v555_v30  ;;  %v551_v40 = vmax.f32 %v535_v32, 0.0  ;;  %1136 = vset.pattern.permute.xlu0 %v1222_v27  ;;  %v1224_v30 = vmov 5   ;;  %v738_v32 = vpop.permute.xlu0 %737 }
 0x1fd   :  { %v530_v39 = vadd.f32 %v529_v38, %v412_v22  ;;  %1079 = vmatprep.subr.bf16.mxu0 %v556_v28  ;;  %v549_v42 = vmax.f32 %v527_v35, 0.0  ;;  %834 = vperm.xlu1 %1135, %v1267_v6   ;;  %v743_v31 = vpop.permute.xlu1 %742 }
 0x1fe   :  { %v552_v41 = vmax.f32 %v538_v37, 0.0  ;;  %839 = vperm.xlu0 %1136, %v1279_v10  }
 0x1ff   :  { %v550_v43 = vmax.f32 %v530_v39, 0.0 }
 0x200   :  { %v558_v44 = vpack.c.bf16 %v552_v41, %v551_v40  ;;  %1080 = vmatpush3.bf16.msra.mxu0 %v556_v28  ;;  %v917_v28 = vld [vmem:[%s1388_s2] sm:$0x1]  ;;  %v753_v35 = vpop.permute.xlu0 %752  ;;  %s1225_s2 = smov [#allocation5]  }
 0x201   :  { %v557_v45 = vpack.c.bf16 %v550_v43, %v549_v42  ;;  %1137 = vset.pattern.permute.xlu1 %v1223_v29  ;;  %v748_v33 = vpop.permute.xlu1 %747  ;;  %s938_s4 = sshll.u32 %s1225_s2, 4  ;;  %s939_s4 = int_to_ptr.vmem [resolvable:$true] %s938_s4 }
 0x202   :  { %1138 = vset.pattern.permute.xlu0 %v1224_v30  ;;  %898 = vperm.xlu1 %1137, %v1267_v6   ;;  %s1187_s5 = scalar_lea.vmem %s939_s4, 16  ;;  %s1191_s6 = scalar_lea.vmem %s939_s4, 32 }
 0x203   :  { %1081 = vmatprep.subr.bf16.mxu0 %v557_v45  ;;  %920 = vperm.xlu0 %1138, %v917_v28   ;;  %p1188_p8 = scmp.ne.s32.totalorder %s939_s4, %s1187_s5  ;;  %p1192_p9 = scmp.lt.s32.totalorder %s939_s4, %s939_s4 }
 0x204   :  { %1082 = vmatpush3.bf16.msra.mxu0 %v557_v45  ;;  %p1193_p10 = scmp.lt.s32.totalorder %s1191_s6, %s1187_s5 }
 0x205   :  { %1083 = vmatprep.subr.bf16.mxu0 %v558_v44 }
 0x206   :  { %902 = vperm.xlu1 %1137, %v1279_v10   ;;  %v1160_v10 = vld [vmem:[#allocation2 + $0x100] sm:$0xff]   ;;  %p1194_p11 = por %p1193_p10, %p1192_p9 }
 0x208   :  { %1084 = vmatpush3.bf16.msra.mxu0 %v558_v44  ;;  %p1195_p12 = pnand %p1194_p11, %p1188_p8 }
 0x20b   :  { %1086 = vmatmul.mubr.msk.bf16.vlgmr.msra.gmra.mrb[16].mxu0 %vm636_vm2, %v1155_v46 }
 0x20c   :  { %1089 = vmatprep.mubr.msk.bf16.mxu0 %vm636_vm2, %v1156_v47 }
 0x213   :  { %1090 = vmatmul.mubr.msk.bf16.gmra.mrb[20].mxu0 %vm636_vm2, %v1157_v48 }
 0x214   :  { %1101 = vmatprep.mubr.msk.bf16.mxu0 %vm765_vm3, %v1158_v49 }
 0x27c   :  { %v835_v48 = vpop.permute.xlu1 %834 }
 0x27d   :  { %v840_v50 = vpop.permute.xlu0 %839 }
 0x2de   :  { %v1087_v55 = vpop.f32.mrb[16].mxu0 }
 0x2df   :  { %v692_v56 = vadd.f32 %v1087_v55, %v589_v52  ;;  %v683_v57 = vpop.f32.mrb[17].mxu0 }
 0x2e0   :  { %v684_v59 = vadd.f32 %v683_v57, %v579_v51  ;;  %v1088_v60 = vpop.f32.mrb[18].mxu0 }
 0x2e1   :  { %v695_v61 = vadd.f32 %v1088_v60, %v594_v54  ;;  %v686_v62 = vpop.f32.mrb[19].mxu0  ;;  %v716_v0 = vmax.f32 %v692_v56, 0.0  ;;  %v899_v56 = vpop.permute.xlu1 %898 }
 0x2e2   :  { %v687_v63 = vadd.f32 %v686_v62, %v584_v53  ;;  %v714_v16 = vmax.f32 %v684_v59, 0.0 }
 0x2e3   :  { %v717_v1 = vmax.f32 %v695_v61, 0.0 }
 0x2e4   :  { %v715_v7 = vmax.f32 %v687_v63, 0.0 }
 0x2e5   :  { %v723_v2 = vpack.c.bf16 %v717_v1, %v716_v0  ;;  %v903_v62 = vpop.permute.xlu1 %902 }
 0x2e6   :  { %v722_v13 = vpack.c.bf16 %v715_v7, %v714_v16  ;;  %v1091_v3 = vpop.f32.mrb[20].mxu0 }
 0x2e7   :  { %v708_v17 = vadd.f32 %v1091_v3, %v609_v11  ;;  %v699_v4 = vpop.f32.mrb[21].mxu0 }
 0x2e8   :  { %v700_v8 = vadd.f32 %v699_v4, %v599_v58  ;;  %v1092_v9 = vpop.f32.mrb[22].mxu0  ;;  %1093 = vmatprep.subr.bf16.mxu0 %v722_v13 }
 0x2e9   :  { %v711_v14 = vadd.f32 %v1092_v9, %v614_v5  ;;  %v702_v15 = vpop.f32.mrb[23].mxu0  ;;  %1094 = vmatpush3.bf16.msra.mxu0 %v722_v13  ;;  %v720_v19 = vmax.f32 %v708_v17, 0.0  ;;  %v921_v17 = vpop.permute.xlu0 %920 }
 0x2ea   :  { %v703_v18 = vadd.f32 %v702_v15, %v604_v12  ;;  %1095 = vmatprep.subr.bf16.mxu0 %v723_v2  ;;  %v718_v21 = vmax.f32 %v700_v8, 0.0 }
 0x2eb   :  { %v721_v20 = vmax.f32 %v711_v14, 0.0 }
 0x2ec   :  { %v719_v22 = vmax.f32 %v703_v18, 0.0 }
 0x2ed   :  { %v725_v23 = vpack.c.bf16 %v721_v20, %v720_v19  ;;  %1096 = vmatpush3.bf16.msra.mxu0 %v723_v2 }
 0x2ee   :  { %v724_v24 = vpack.c.bf16 %v719_v22, %v718_v21 }
 0x2f0   :  { %1097 = vmatprep.subr.bf16.mxu0 %v724_v24 }
 0x2f1   :  { %1098 = vmatpush3.bf16.msra.mxu0 %v724_v24 }
 0x2f2   :  { %1099 = vmatprep.subr.bf16.mxu0 %v725_v23 }
 0x2f5   :  { %1100 = vmatpush3.bf16.msra.mxu0 %v725_v23 }
 0x2f8   :  { %1102 = vmatmul.mubr.msk.bf16.vlgmr.msra.gmra.mrb[24].mxu0 %vm765_vm3, %v1159_v25 }
 0x3cb   :  { %v1103_v34 = vpop.f32.mrb[24].mxu0 }
 0x3cc   :  { %v815_v36 = vadd.f32 %v1103_v34, %v748_v33  ;;  %v806_v37 = vpop.f32.mrb[25].mxu0 }
 0x3cd   :  { %v807_v38 = vadd.f32 %v806_v37, %v738_v32  ;;  %v1104_v39 = vpop.f32.mrb[26].mxu0 }
 0x3ce   :  { %v818_v40 = vadd.f32 %v1104_v39, %v753_v35  ;;  %v809_v41 = vpop.f32.mrb[27].mxu0  ;;  %v823_v43 = vmax.f32 %v815_v36, 0.0 }
 0x3cf   :  { %v810_v42 = vadd.f32 %v809_v41, %v743_v31  ;;  %v821_v45 = vmax.f32 %v807_v38, 0.0 }
 0x3d0   :  { %v824_v44 = vmax.f32 %v818_v40, 0.0 }
 0x3d1   :  { %v822_v46 = vmax.f32 %v810_v42, 0.0 }
 0x3d2   :  { %v826_v6 = vpack.c.bf16 %v824_v44, %v823_v43 }
 0x3d3   :  { %v825_v47 = vpack.c.bf16 %v822_v46, %v821_v45 }
 0x3d5   :  { %1106 = vmatpush3.bf16.msra.mxu1 %v825_v47 }
 0x3d6   :  { %1107 = vmatprep.subr.bf16.mxu1 %v1220_v26 }
 0x3d9   :  { %1108 = vmatpush3.bf16.msra.mxu1 %v826_v6 }
 0x3dc   :  { %1110 = vmatmul.mubr.msk.bf16.vlgmr.msra.gmra.mrb[12].mxu1 %vm847_vm5, %v1160_v10 }
 0x4af   :  { %v885_v49 = vpop.f32.mrb[12].mxu1 }
 0x4b0   :  { %v1111_v51 = vpop.f32.mrb[13].mxu1  ;;  %v886_v52 = vadd.f32 %v885_v49, %v835_v48 }
 0x4b1   :  { %v888_v53 = vpop.f32.mrb[14].mxu1 }
 0x4b2   :  { %v889_v54 = vadd.f32 %v888_v53, %v840_v50  ;;  %v1112_v55 = vpop.f32.mrb[15].mxu1  ;;  %v892_v57 = vmax.f32 %v886_v52, 0.0 }
 0x4b4   :  { %v893_v58 = vmax.f32 %v889_v54, 0.0 }
 0x4b6   :  { %v894_v59 = vpack.c.bf16 %v893_v58, %v892_v57 }
 0x4b8   :  { %v895_v60 = vunpack.c.l.bf16 %v894_v59  ;;  %v896_v61 = vunpack.c.h.bf16 %v894_v59 }
 0x4ba   :  { %v905_v12 = vmul.f32 %v899_v56, %v895_v60  ;;  %v906_v63 = vmul.f32 %v903_v62, %v896_v61 }
 0x4bc   :  { %v908_v0 = vsel %vm907_vm6, %v905_v12, 0.0  ;;  %v909_v1 = vsel %vm907_vm6, %v906_v63, 0.0 }
 0x4bd   :  { %v910_v16 = vadd.f32 %v909_v1, %v908_v0 }
 0x4bf   :  { %v911_v7 = vrot.slane %v910_v16, 4 }
 0x4c1   :  { %v912_v2 = vadd.f32 %v911_v7, %v910_v16 }
 0x4c3   :  { %v913_v11 = vrot.slane %v912_v2, 2 }
 0x4c5   :  { %v914_v13 = vadd.f32 %v913_v11, %v912_v2 }
 0x4c7   :  { %v915_v3 = vrot.slane %v914_v13, 1 }
 0x4c9   :  { %v916_v4 = vadd.f32 %v915_v3, %v914_v13 }
 0x4cb   :  { %v923_v5 = vadd.f32 %v921_v17, %v916_v4 }
 0x4cd   :  { %v984_v8 = vmul.f32 -1.442695, %v923_v5 }
 0x4cf   :  { %1161 = vpow2.f32 %v984_v8 }
 0x4d9   :  { %v1162_v9 = vpop.eup %1161 }
 0x4da   :  { %v927_v14 = vadd.f32 1.0, %v1162_v9 }
 0x4dc   :  { %1163 = vrcp.f32 %v927_v14 }
 0x4e6   :  { %v1164_v15 = vpop.eup %1163 }
 0x4e7   :  { %931 = vst.msk [vmem:[#allocation5] sm:$0x1] %vm930_vm7, %v1164_v15 }
 0x4e8   :  { %1198 = shalt.err (!%p1195_p12)
}
 0x4e9   :  { %s1199_s9 = scalar_lea.hbm %s1389_s3, 16 }
 0x4ea   :  { %p1200_p13 = scmp.ne.s32.totalorder %s1389_s3, %s1199_s9  ;;  %p1203_p0 = scmp.lt.u32.totalorder %s1199_s9, %s1389_s3 }
 0x4ec   :  { %p1205_p1 = pnand %p1203_p0, %p1200_p13 }
 0x4ee   :  { %1208 = shalt.err (!%p1205_p1)
}
 0x4ef   :  { %941 = dma.vmem_to_hbm [thread:$0]  %s939_s4, 16, %s1389_s3, [#allocation4]  }
 0x4f0   :  { %1211 = dma.done.wait [#allocation4], 16  }
 0x4f1   :  { %1212 = vsyncadd [#allocation4], 4294967280 }
 0x4f2   :  { %945 = vsyncpa [#allocation3], 1 }
 0x4f3   :  { %946 = vsyncpa [#allocation4], 1 }

</bundles_post_ra>
